<compile_context>
chip_gen: v7x
topology: tpu7x:2x2x1
jax: 0.10.0
libtpu: 0.0.40
codegen_flags: <defaults>
</compile_context>

<pallas_src>
import jax
import jax.numpy as jnp
from jax.experimental import pallas as pl
from jax.experimental.pallas import tpu as pltpu


# ----------------------------- Pallas kernel --------------------------------

def iaff_kernel(x_ref, r_ref, w_ref, b_ref, o_ref):
    """Fused iAFF forward, one sample at a time (static unroll over batch).

    x_ref / r_ref / o_ref : (N, C, P) f32  (NCHW with H*W flattened)
    w_ref : (4, 2C, 2C) block-diagonal folded conv+BN weights
            [ diag(wl1,wg1), diag(wl2,wg2), diag(wm1,wg1), diag(wm2,wg2) ]
    b_ref : (2C, 4) stacked folded biases (same order, one per column)
    """
    n, c, p = x_ref.shape
    inv_p = 1.0 / p

    def fused_stage(inp, j):
        # [local ; global] branches as one pair of block-diagonal matmuls.
        # AdaptiveAvgPool2d(1) = per-sample lane mean; broadcast back to all
        # pixels BEFORE the branch (1x1 conv / BN / ReLU are per-column ops).
        pooled = jnp.sum(inp, axis=1, keepdims=True) * inv_p             # (C, 1)
        s = jnp.concatenate(
            [inp, jnp.broadcast_to(pooled, (c, p))], axis=0)             # (2C, P)
        w1, b1 = w_ref[j], b_ref[:, j:j + 1]
        w2, b2 = w_ref[j + 1], b_ref[:, j + 1:j + 2]
        h = jnp.maximum(
            jnp.dot(w1, s, preferred_element_type=jnp.float32) + b1, 0.0)
        y = jnp.dot(w2, h, preferred_element_type=jnp.float32) + b2      # (2C, P)
        return y[:c, :] + y[c:, :]                                       # xl + xg

    for i in range(n):                     # static unroll over the batch
        x = x_ref[i]                       # (C, P); fully read before o_ref[i]
        r = r_ref[i]
        d = x - r
        xa = x + r
        # stage 1: local_att + global_att
        xi = r + d * jax.nn.sigmoid(fused_stage(xa, 0))
        # stage 2: local_att2 + global_att (reused, matching the PyTorch code)
        out = r + d * jax.nn.sigmoid(fused_stage(xi, 2))
        o_ref[i] = out


# ------------------------------ wrapper --------------------------------------

def pack_iaff_params(params):
    """Pack the 12 folded (conv+BN) arrays into the kernel's 2 slabs.

    Call ONCE at init time (not per forward call).
    params = [wl1, bl1, wl2, bl2, wg1, bg1, wg2, bg2, wm1, bm1, wm2, bm2]
    with folded weights (Cout, Cin) and folded biases (Cout,).
    """
    (wl1, bl1, wl2, bl2, wg1, bg1, wg2, bg2, wm1, bm1, wm2, bm2) = params

    def block_diag(a, b):
        za = jnp.zeros((a.shape[0], b.shape[1]), a.dtype)
        zb = jnp.zeros((b.shape[0], a.shape[1]), b.dtype)
        return jnp.concatenate(
            [jnp.concatenate([a, za], axis=1),
             jnp.concatenate([zb, b], axis=1)], axis=0)

    w_all = jnp.stack([block_diag(wl1, wg1), block_diag(wl2, wg2),
                       block_diag(wm1, wg1), block_diag(wm2, wg2)], axis=0)
    b_all = jnp.stack([jnp.concatenate([bl1, bg1]),
                       jnp.concatenate([bl2, bg2]),
                       jnp.concatenate([bm1, bg1]),
                       jnp.concatenate([bm2, bg2])], axis=1)              # (2C, 4)
    return w_all, b_all


@jax.jit
def iaff_forward(x, residual, w_all, b_all):
    """x, residual: (N, C, H, W) float32 (NCHW, like the PyTorch module)."""
    N, C, H, W = x.shape
    P = H * W
    n_matmuls = 4 * N                                   # 2 per stage, 2 stages
    flops = n_matmuls * 2 * (2 * C) * (2 * C) * P
    out = pl.pallas_call(
        iaff_kernel,
        out_shape=jax.ShapeDtypeStruct((N, C, P), jnp.float32),
        in_specs=[pl.BlockSpec(memory_space=pltpu.MemorySpace.VMEM)] * 4,
        out_specs=pl.BlockSpec(memory_space=pltpu.MemorySpace.VMEM),
        input_output_aliases={0: 0},                    # x is fully read first
        cost_estimate=pl.CostEstimate(
            flops=flops,
            transcendentals=2 * N * C * P,
            bytes_accessed=3 * N * C * P * 4 + w_all.size * 4 + b_all.size * 4),
    )(x.reshape(N, C, P), residual.reshape(N, C, P), w_all, b_all)
    return out.reshape(N, C, H, W)


# ------------------------- parameter construction ----------------------------

def fold_conv_bn(w, b, gamma, beta, mean, var, eps=1e-5):
    """Fold inference-mode BatchNorm into a 1x1 conv expressed as (Cout, Cin)."""
    s = gamma / jnp.sqrt(var + eps)
    w_eff = (w * s[:, None]).astype(jnp.float32)
    b_eff = (s * (b - mean) + beta).astype(jnp.float32)
    return w_eff, b_eff


def make_branch_params(key, c_in, c_mid, c_out):
    ks = jax.random.split(key, 12)
    w1 = jax.random.normal(ks[0], (c_mid, c_in), jnp.float32) / jnp.sqrt(c_in)
    b1 = 0.1 * jax.random.normal(ks[1], (c_mid,), jnp.float32)
    g1 = 1.0 + 0.1 * jax.random.normal(ks[2], (c_mid,), jnp.float32)
    be1 = 0.1 * jax.random.normal(ks[3], (c_mid,), jnp.float32)
    m1 = 0.1 * jax.random.normal(ks[4], (c_mid,), jnp.float32)
    v1 = 1.0 + 0.1 * jnp.abs(jax.random.normal(ks[5], (c_mid,), jnp.float32))

    w2 = jax.random.normal(ks[6], (c_out, c_mid), jnp.float32) / jnp.sqrt(c_mid)
    b2 = 0.1 * jax.random.normal(ks[7], (c_out,), jnp.float32)
    g2 = 1.0 + 0.1 * jax.random.normal(ks[8], (c_out,), jnp.float32)
    be2 = 0.1 * jax.random.normal(ks[9], (c_out,), jnp.float32)
    m2 = 0.1 * jax.random.normal(ks[10], (c_out,), jnp.float32)
    v2 = 1.0 + 0.1 * jnp.abs(jax.random.normal(ks[11], (c_out,), jnp.float32))

    w1f, b1f = fold_conv_bn(w1, b1, g1, be1, m1, v1)
    w2f, b2f = fold_conv_bn(w2, b2, g2, be2, m2, v2)
    return [w1f, b1f, w2f, b2f]


# --------------------------- pure-JAX reference -------------------------------

def ref_forward(x, r, params):
    (wl1, bl1, wl2, bl2, wg1, bg1, wg2, bg2, wm1, bm1, wm2, bm2) = params

    def conv1x1(t, w, b):
        return jnp.einsum('oc,nchw->nohw', w, t) + b[None, :, None, None]

    def local(t, w1, b1, w2, b2):
        return conv1x1(jnp.maximum(conv1x1(t, w1, b1), 0.0), w2, b2)

    def glob(t, w1, b1, w2, b2):
        m = jnp.mean(t, axis=(2, 3), keepdims=True)
        return conv1x1(jnp.maximum(conv1x1(m, w1, b1), 0.0), w2, b2)

    xa = x + r
    wei = jax.nn.sigmoid(local(xa, wl1, bl1, wl2, bl2) + glob(xa, wg1, bg1, wg2, bg2))
    xi = x * wei + r * (1.0 - wei)
    wei2 = jax.nn.sigmoid(local(xi, wm1, bm1, wm2, bm2) + glob(xi, wg1, bg1, wg2, bg2))
    return x * wei2 + r * (1.0 - wei2)


# ----------------------------------- main -------------------------------------

if __name__ == "__main__":
    channels = 32            # iAFF(channels=32, r=1) -> inter_channels = 32
    r_ratio = 1
    inter = channels // r_ratio
    assert inter == channels, "block-diagonal packing assumes r == 1 (inter == channels)"
    N, H, W = 2, 8, 8

    key = jax.random.PRNGKey(0)
    k_x, k_r, k_l, k_g, k_m = jax.random.split(key, 5)

    x = jax.random.normal(k_x, (N, channels, H, W), jnp.float32)
    residual = jax.random.normal(k_r, (N, channels, H, W), jnp.float32)

    params = (make_branch_params(k_l, channels, inter, channels)      # local_att
              + make_branch_params(k_g, channels, inter, channels)    # global_att
              + make_branch_params(k_m, channels, inter, channels))   # local_att2
    # global_att2 exists in __init__ but is unused in forward -> not constructed.

    # Parameter packing done ONCE at init (review item 1), not per call.
    w_all, b_all = pack_iaff_params(tuple(params))

    out = jax.block_until_ready(iaff_forward(x, residual, w_all, b_all))
    ref = jax.block_until_ready(ref_forward(x, residual, params))

    assert out.shape == (N, channels, H, W)
    err = float(jnp.max(jnp.abs(out - ref)))
    assert jnp.allclose(out, ref, rtol=2e-3, atol=2e-3), err
    print("KERNEL_OK")
</pallas_src>

<mosaic_0001>
module attributes {stable_mosaic.version = 11 : i64} {
  func.func @iaff_kernel(%arg0: memref<2x32x64xf32, #tpu.memory_space<vmem>>, %arg1: memref<2x32x64xf32, #tpu.memory_space<vmem>>, %arg2: memref<4x64x64xf32, #tpu.memory_space<vmem>>, %arg3: memref<64x4xf32, #tpu.memory_space<vmem>>, %arg4: memref<2x32x64xf32, #tpu.memory_space<vmem>>) attributes {dimension_semantics = [], scalar_prefetch = 0 : i64, scratch_operands = 0 : i64, tpu.core_type = #tpu.core_type<tc>} {
    %c0 = arith.constant 0 : index
    %c0_0 = arith.constant 0 : index
    %c0_1 = arith.constant 0 : index
    %0 = vector.load %arg0[%c0, %c0_0, %c0_1] : memref<2x32x64xf32, #tpu.memory_space<vmem>>, vector<1x32x64xf32>
    %1 = vector.shape_cast %0 : vector<1x32x64xf32> to vector<32x64xf32>
    %c0_2 = arith.constant 0 : index
    %c0_3 = arith.constant 0 : index
    %c0_4 = arith.constant 0 : index
    %2 = vector.load %arg1[%c0_2, %c0_3, %c0_4] : memref<2x32x64xf32, #tpu.memory_space<vmem>>, vector<1x32x64xf32>
    %3 = vector.shape_cast %2 : vector<1x32x64xf32> to vector<32x64xf32>
    %4 = arith.subf %1, %3 : vector<32x64xf32>
    %5 = arith.addf %1, %3 : vector<32x64xf32>
    %cst = arith.constant dense<0.000000e+00> : vector<32xf32>
    %6 = vector.multi_reduction <add>, %5, %cst [1] : vector<32x64xf32> to vector<32xf32>
    %7 = vector.shape_cast %6 : vector<32xf32> to vector<32x1xf32>
    %cst_5 = arith.constant 1.562500e-02 : f32
    %8 = vector.broadcast %cst_5 : f32 to vector<32x1xf32>
    %9 = arith.mulf %7, %8 : vector<32x1xf32>
    %10 = vector.shape_cast %9 : vector<32x1xf32> to vector<32x1xf32>
    %11 = vector.broadcast %10 : vector<32x1xf32> to vector<32x64xf32>
    %12 = tpu.concatenate %5, %11 in 0 : vector<32x64xf32>, vector<32x64xf32> -> vector<64x64xf32>
    %c0_6 = arith.constant 0 : index
    %c0_7 = arith.constant 0 : index
    %c0_8 = arith.constant 0 : index
    %13 = vector.load %arg2[%c0_6, %c0_7, %c0_8] : memref<4x64x64xf32, #tpu.memory_space<vmem>>, vector<1x64x64xf32>
    %14 = vector.shape_cast %13 : vector<1x64x64xf32> to vector<64x64xf32>
    %c0_9 = arith.constant 0 : index
    %c0_10 = arith.constant 0 : index
    %15 = vector.load %arg3[%c0_9, %c0_10] : memref<64x4xf32, #tpu.memory_space<vmem>>, vector<64x1xf32>
    %c1 = arith.constant 1 : index
    %c0_11 = arith.constant 0 : index
    %c0_12 = arith.constant 0 : index
    %16 = vector.load %arg2[%c1, %c0_11, %c0_12] : memref<4x64x64xf32, #tpu.memory_space<vmem>>, vector<1x64x64xf32>
    %17 = vector.shape_cast %16 : vector<1x64x64xf32> to vector<64x64xf32>
    %c0_13 = arith.constant 0 : index
    %c1_14 = arith.constant 1 : index
    %18 = vector.load %arg3[%c0_13, %c1_14] : memref<64x4xf32, #tpu.memory_space<vmem>>, vector<64x1xf32>
    %cst_15 = arith.constant dense<0.000000e+00> : vector<64x64xf32>
    %19 = tpu.matmul %14, %12, %cst_15 {dimension_numbers = #tpu.dot_dimension_numbers<[1], [0], [0], [1], [0, 0, 1, 1], [], []>} : vector<64x64xf32>, vector<64x64xf32>, vector<64x64xf32> -> vector<64x64xf32>
    %20 = vector.broadcast %15 : vector<64x1xf32> to vector<64x64xf32>
    %21 = arith.addf %19, %20 : vector<64x64xf32>
    %cst_16 = arith.constant 0.000000e+00 : f32
    %22 = vector.broadcast %cst_16 : f32 to vector<64x64xf32>
    %23 = arith.maximumf %21, %22 : vector<64x64xf32>
    %cst_17 = arith.constant dense<0.000000e+00> : vector<64x64xf32>
    %24 = tpu.matmul %17, %23, %cst_17 {dimension_numbers = #tpu.dot_dimension_numbers<[1], [0], [0], [1], [0, 0, 1, 1], [], []>} : vector<64x64xf32>, vector<64x64xf32>, vector<64x64xf32> -> vector<64x64xf32>
    %25 = vector.broadcast %18 : vector<64x1xf32> to vector<64x64xf32>
    %26 = arith.addf %24, %25 : vector<64x64xf32>
    %27 = vector.extract_strided_slice %26 {offsets = [0, 0], sizes = [32, 64], strides = [1, 1]} : vector<64x64xf32> to vector<32x64xf32>
    %28 = vector.extract_strided_slice %26 {offsets = [32, 0], sizes = [32, 64], strides = [1, 1]} : vector<64x64xf32> to vector<32x64xf32>
    %29 = arith.addf %27, %28 : vector<32x64xf32>
    %30 = arith.negf %29 : vector<32x64xf32>
    %31 = math.exp %30 : vector<32x64xf32>
    %cst_18 = arith.constant 1.000000e+00 : f32
    %32 = vector.broadcast %cst_18 : f32 to vector<32x64xf32>
    %33 = arith.addf %32, %31 : vector<32x64xf32>
    %34 = arith.divf %32, %33 : vector<32x64xf32>
    %35 = arith.mulf %4, %34 : vector<32x64xf32>
    %36 = arith.addf %3, %35 : vector<32x64xf32>
    %cst_19 = arith.constant dense<0.000000e+00> : vector<32xf32>
    %37 = vector.multi_reduction <add>, %36, %cst_19 [1] : vector<32x64xf32> to vector<32xf32>
    %38 = vector.shape_cast %37 : vector<32xf32> to vector<32x1xf32>
    %cst_20 = arith.constant 1.562500e-02 : f32
    %39 = vector.broadcast %cst_20 : f32 to vector<32x1xf32>
    %40 = arith.mulf %38, %39 : vector<32x1xf32>
    %41 = vector.shape_cast %40 : vector<32x1xf32> to vector<32x1xf32>
    %42 = vector.broadcast %41 : vector<32x1xf32> to vector<32x64xf32>
    %43 = tpu.concatenate %36, %42 in 0 : vector<32x64xf32>, vector<32x64xf32> -> vector<64x64xf32>
    %c2 = arith.constant 2 : index
    %c0_21 = arith.constant 0 : index
    %c0_22 = arith.constant 0 : index
    %44 = vector.load %arg2[%c2, %c0_21, %c0_22] : memref<4x64x64xf32, #tpu.memory_space<vmem>>, vector<1x64x64xf32>
    %45 = vector.shape_cast %44 : vector<1x64x64xf32> to vector<64x64xf32>
    %c0_23 = arith.constant 0 : index
    %c2_24 = arith.constant 2 : index
    %46 = vector.load %arg3[%c0_23, %c2_24] : memref<64x4xf32, #tpu.memory_space<vmem>>, vector<64x1xf32>
    %c3 = arith.constant 3 : index
    %c0_25 = arith.constant 0 : index
    %c0_26 = arith.constant 0 : index
    %47 = vector.load %arg2[%c3, %c0_25, %c0_26] : memref<4x64x64xf32, #tpu.memory_space<vmem>>, vector<1x64x64xf32>
    %48 = vector.shape_cast %47 : vector<1x64x64xf32> to vector<64x64xf32>
    %c0_27 = arith.constant 0 : index
    %c3_28 = arith.constant 3 : index
    %49 = vector.load %arg3[%c0_27, %c3_28] : memref<64x4xf32, #tpu.memory_space<vmem>>, vector<64x1xf32>
    %cst_29 = arith.constant dense<0.000000e+00> : vector<64x64xf32>
    %50 = tpu.matmul %45, %43, %cst_29 {dimension_numbers = #tpu.dot_dimension_numbers<[1], [0], [0], [1], [0, 0, 1, 1], [], []>} : vector<64x64xf32>, vector<64x64xf32>, vector<64x64xf32> -> vector<64x64xf32>
    %51 = vector.broadcast %46 : vector<64x1xf32> to vector<64x64xf32>
    %52 = arith.addf %50, %51 : vector<64x64xf32>
    %cst_30 = arith.constant 0.000000e+00 : f32
    %53 = vector.broadcast %cst_30 : f32 to vector<64x64xf32>
    %54 = arith.maximumf %52, %53 : vector<64x64xf32>
    %cst_31 = arith.constant dense<0.000000e+00> : vector<64x64xf32>
    %55 = tpu.matmul %48, %54, %cst_31 {dimension_numbers = #tpu.dot_dimension_numbers<[1], [0], [0], [1], [0, 0, 1, 1], [], []>} : vector<64x64xf32>, vector<64x64xf32>, vector<64x64xf32> -> vector<64x64xf32>
    %56 = vector.broadcast %49 : vector<64x1xf32> to vector<64x64xf32>
    %57 = arith.addf %55, %56 : vector<64x64xf32>
    %58 = vector.extract_strided_slice %57 {offsets = [0, 0], sizes = [32, 64], strides = [1, 1]} : vector<64x64xf32> to vector<32x64xf32>
    %59 = vector.extract_strided_slice %57 {offsets = [32, 0], sizes = [32, 64], strides = [1, 1]} : vector<64x64xf32> to vector<32x64xf32>
    %60 = arith.addf %58, %59 : vector<32x64xf32>
    %61 = arith.negf %60 : vector<32x64xf32>
    %62 = math.exp %61 : vector<32x64xf32>
    %cst_32 = arith.constant 1.000000e+00 : f32
    %63 = vector.broadcast %cst_32 : f32 to vector<32x64xf32>
    %64 = arith.addf %63, %62 : vector<32x64xf32>
    %65 = arith.divf %63, %64 : vector<32x64xf32>
    %66 = arith.mulf %4, %65 : vector<32x64xf32>
    %67 = arith.addf %3, %66 : vector<32x64xf32>
    %c0_33 = arith.constant 0 : index
    %c0_34 = arith.constant 0 : index
    %c0_35 = arith.constant 0 : index
    %68 = vector.load %arg4[%c0_33, %c0_34, %c0_35] : memref<2x32x64xf32, #tpu.memory_space<vmem>>, vector<1x32x64xf32>
    %69 = vector.shape_cast %68 : vector<1x32x64xf32> to vector<32x64xf32>
    %70 = vector.shape_cast %67 : vector<32x64xf32> to vector<1x32x64xf32>
    tpu.vector_store %arg4[%c0_33, %c0_34, %c0_35], %70 {strides = array<i32>} : memref<2x32x64xf32, #tpu.memory_space<vmem>>, vector<1x32x64xf32>,
    %c1_36 = arith.constant 1 : index
    %c0_37 = arith.constant 0 : index
    %c0_38 = arith.constant 0 : index
    %71 = vector.load %arg0[%c1_36, %c0_37, %c0_38] : memref<2x32x64xf32, #tpu.memory_space<vmem>>, vector<1x32x64xf32>
    %72 = vector.shape_cast %71 : vector<1x32x64xf32> to vector<32x64xf32>
    %c1_39 = arith.constant 1 : index
    %c0_40 = arith.constant 0 : index
    %c0_41 = arith.constant 0 : index
    %73 = vector.load %arg1[%c1_39, %c0_40, %c0_41] : memref<2x32x64xf32, #tpu.memory_space<vmem>>, vector<1x32x64xf32>
    %74 = vector.shape_cast %73 : vector<1x32x64xf32> to vector<32x64xf32>
    %75 = arith.subf %72, %74 : vector<32x64xf32>
    %76 = arith.addf %72, %74 : vector<32x64xf32>
    %cst_42 = arith.constant dense<0.000000e+00> : vector<32xf32>
    %77 = vector.multi_reduction <add>, %76, %cst_42 [1] : vector<32x64xf32> to vector<32xf32>
    %78 = vector.shape_cast %77 : vector<32xf32> to vector<32x1xf32>
    %cst_43 = arith.constant 1.562500e-02 : f32
    %79 = vector.broadcast %cst_43 : f32 to vector<32x1xf32>
    %80 = arith.mulf %78, %79 : vector<32x1xf32>
    %81 = vector.shape_cast %80 : vector<32x1xf32> to vector<32x1xf32>
    %82 = vector.broadcast %81 : vector<32x1xf32> to vector<32x64xf32>
    %83 = tpu.concatenate %76, %82 in 0 : vector<32x64xf32>, vector<32x64xf32> -> vector<64x64xf32>
    %c0_44 = arith.constant 0 : index
    %c0_45 = arith.constant 0 : index
    %c0_46 = arith.constant 0 : index
    %84 = vector.load %arg2[%c0_44, %c0_45, %c0_46] : memref<4x64x64xf32, #tpu.memory_space<vmem>>, vector<1x64x64xf32>
    %85 = vector.shape_cast %84 : vector<1x64x64xf32> to vector<64x64xf32>
    %c0_47 = arith.constant 0 : index
    %c0_48 = arith.constant 0 : index
    %86 = vector.load %arg3[%c0_47, %c0_48] : memref<64x4xf32, #tpu.memory_space<vmem>>, vector<64x1xf32>
    %c1_49 = arith.constant 1 : index
    %c0_50 = arith.constant 0 : index
    %c0_51 = arith.constant 0 : index
    %87 = vector.load %arg2[%c1_49, %c0_50, %c0_51] : memref<4x64x64xf32, #tpu.memory_space<vmem>>, vector<1x64x64xf32>
    %88 = vector.shape_cast %87 : vector<1x64x64xf32> to vector<64x64xf32>
    %c0_52 = arith.constant 0 : index
    %c1_53 = arith.constant 1 : index
    %89 = vector.load %arg3[%c0_52, %c1_53] : memref<64x4xf32, #tpu.memory_space<vmem>>, vector<64x1xf32>
    %cst_54 = arith.constant dense<0.000000e+00> : vector<64x64xf32>
    %90 = tpu.matmul %85, %83, %cst_54 {dimension_numbers = #tpu.dot_dimension_numbers<[1], [0], [0], [1], [0, 0, 1, 1], [], []>} : vector<64x64xf32>, vector<64x64xf32>, vector<64x64xf32> -> vector<64x64xf32>
    %91 = vector.broadcast %86 : vector<64x1xf32> to vector<64x64xf32>
    %92 = arith.addf %90, %91 : vector<64x64xf32>
    %cst_55 = arith.constant 0.000000e+00 : f32
    %93 = vector.broadcast %cst_55 : f32 to vector<64x64xf32>
    %94 = arith.maximumf %92, %93 : vector<64x64xf32>
    %cst_56 = arith.constant dense<0.000000e+00> : vector<64x64xf32>
    %95 = tpu.matmul %88, %94, %cst_56 {dimension_numbers = #tpu.dot_dimension_numbers<[1], [0], [0], [1], [0, 0, 1, 1], [], []>} : vector<64x64xf32>, vector<64x64xf32>, vector<64x64xf32> -> vector<64x64xf32>
    %96 = vector.broadcast %89 : vector<64x1xf32> to vector<64x64xf32>
    %97 = arith.addf %95, %96 : vector<64x64xf32>
    %98 = vector.extract_strided_slice %97 {offsets = [0, 0], sizes = [32, 64], strides = [1, 1]} : vector<64x64xf32> to vector<32x64xf32>
    %99 = vector.extract_strided_slice %97 {offsets = [32, 0], sizes = [32, 64], strides = [1, 1]} : vector<64x64xf32> to vector<32x64xf32>
    %100 = arith.addf %98, %99 : vector<32x64xf32>
    %101 = arith.negf %100 : vector<32x64xf32>
    %102 = math.exp %101 : vector<32x64xf32>
    %cst_57 = arith.constant 1.000000e+00 : f32
    %103 = vector.broadcast %cst_57 : f32 to vector<32x64xf32>
    %104 = arith.addf %103, %102 : vector<32x64xf32>
    %105 = arith.divf %103, %104 : vector<32x64xf32>
    %106 = arith.mulf %75, %105 : vector<32x64xf32>
    %107 = arith.addf %74, %106 : vector<32x64xf32>
    %cst_58 = arith.constant dense<0.000000e+00> : vector<32xf32>
    %108 = vector.multi_reduction <add>, %107, %cst_58 [1] : vector<32x64xf32> to vector<32xf32>
    %109 = vector.shape_cast %108 : vector<32xf32> to vector<32x1xf32>
    %cst_59 = arith.constant 1.562500e-02 : f32
    %110 = vector.broadcast %cst_59 : f32 to vector<32x1xf32>
    %111 = arith.mulf %109, %110 : vector<32x1xf32>
    %112 = vector.shape_cast %111 : vector<32x1xf32> to vector<32x1xf32>
    %113 = vector.broadcast %112 : vector<32x1xf32> to vector<32x64xf32>
    %114 = tpu.concatenate %107, %113 in 0 : vector<32x64xf32>, vector<32x64xf32> -> vector<64x64xf32>
    %c2_60 = arith.constant 2 : index
    %c0_61 = arith.constant 0 : index
    %c0_62 = arith.constant 0 : index
    %115 = vector.load %arg2[%c2_60, %c0_61, %c0_62] : memref<4x64x64xf32, #tpu.memory_space<vmem>>, vector<1x64x64xf32>
    %116 = vector.shape_cast %115 : vector<1x64x64xf32> to vector<64x64xf32>
    %c0_63 = arith.constant 0 : index
    %c2_64 = arith.constant 2 : index
    %117 = vector.load %arg3[%c0_63, %c2_64] : memref<64x4xf32, #tpu.memory_space<vmem>>, vector<64x1xf32>
    %c3_65 = arith.constant 3 : index
    %c0_66 = arith.constant 0 : index
    %c0_67 = arith.constant 0 : index
    %118 = vector.load %arg2[%c3_65, %c0_66, %c0_67] : memref<4x64x64xf32, #tpu.memory_space<vmem>>, vector<1x64x64xf32>
    %119 = vector.shape_cast %118 : vector<1x64x64xf32> to vector<64x64xf32>
    %c0_68 = arith.constant 0 : index
    %c3_69 = arith.constant 3 : index
    %120 = vector.load %arg3[%c0_68, %c3_69] : memref<64x4xf32, #tpu.memory_space<vmem>>, vector<64x1xf32>
    %cst_70 = arith.constant dense<0.000000e+00> : vector<64x64xf32>
    %121 = tpu.matmul %116, %114, %cst_70 {dimension_numbers = #tpu.dot_dimension_numbers<[1], [0], [0], [1], [0, 0, 1, 1], [], []>} : vector<64x64xf32>, vector<64x64xf32>, vector<64x64xf32> -> vector<64x64xf32>
    %122 = vector.broadcast %117 : vector<64x1xf32> to vector<64x64xf32>
    %123 = arith.addf %121, %122 : vector<64x64xf32>
    %cst_71 = arith.constant 0.000000e+00 : f32
    %124 = vector.broadcast %cst_71 : f32 to vector<64x64xf32>
    %125 = arith.maximumf %123, %124 : vector<64x64xf32>
    %cst_72 = arith.constant dense<0.000000e+00> : vector<64x64xf32>
    %126 = tpu.matmul %119, %125, %cst_72 {dimension_numbers = #tpu.dot_dimension_numbers<[1], [0], [0], [1], [0, 0, 1, 1], [], []>} : vector<64x64xf32>, vector<64x64xf32>, vector<64x64xf32> -> vector<64x64xf32>
    %127 = vector.broadcast %120 : vector<64x1xf32> to vector<64x64xf32>
    %128 = arith.addf %126, %127 : vector<64x64xf32>
    %129 = vector.extract_strided_slice %128 {offsets = [0, 0], sizes = [32, 64], strides = [1, 1]} : vector<64x64xf32> to vector<32x64xf32>
    %130 = vector.extract_strided_slice %128 {offsets = [32, 0], sizes = [32, 64], strides = [1, 1]} : vector<64x64xf32> to vector<32x64xf32>
    %131 = arith.addf %129, %130 : vector<32x64xf32>
    %132 = arith.negf %131 : vector<32x64xf32>
    %133 = math.exp %132 : vector<32x64xf32>
    %cst_73 = arith.constant 1.000000e+00 : f32
    %134 = vector.broadcast %cst_73 : f32 to vector<32x64xf32>
    %135 = arith.addf %134, %133 : vector<32x64xf32>
    %136 = arith.divf %134, %135 : vector<32x64xf32>
    %137 = arith.mulf %75, %136 : vector<32x64xf32>
    %138 = arith.addf %74, %137 : vector<32x64xf32>
    %c1_74 = arith.constant 1 : index
    %c0_75 = arith.constant 0 : index
    %c0_76 = arith.constant 0 : index
    %139 = vector.load %arg4[%c1_74, %c0_75, %c0_76] : memref<2x32x64xf32, #tpu.memory_space<vmem>>, vector<1x32x64xf32>
    %140 = vector.shape_cast %139 : vector<1x32x64xf32> to vector<32x64xf32>
    %141 = vector.shape_cast %138 : vector<32x64xf32> to vector<1x32x64xf32>
    tpu.vector_store %arg4[%c1_74, %c0_75, %c0_76], %141 {strides = array<i32>} : memref<2x32x64xf32, #tpu.memory_space<vmem>>, vector<1x32x64xf32>,
    return
  }
}

</mosaic_0001>

<bundles_post_ra>
// kernel: iaff_forward.1
= control target key start
LH: loop header
LB: loop body
LE: loop exit
PB: predicated region body
PF: predicated region fallthrough
CT: control target
= control target key end

     0   :  { %vm33_vm0 = vcmask 523264   ;;  %v2448_v19 = vmov 0   ;;  %v2449_v46 = vmov 1   ;;  %s3141_s0 = inlined_call_operand.vmem [shape: f32[2,32,64], index: 0, kind: input, shape index: {}, may-alias: {0,4}]   ;;  %s3142_s1 = inlined_call_operand.vmem [shape: f32[2,32,64], index: 1, kind: input, shape index: {}]   ;;  %s3143_s2 = inlined_call_operand.vmem [shape: f32[4,64,64], index: 2, kind: input, shape index: {}]   ;;  %s3144_s3 = inlined_call_operand.vmem [shape: f32[64,4], index: 3, kind: input, shape index: {}]   ;;  %s3145_s4 = inlined_call_operand.vmem [shape: f32[2,32,64], index: 4, kind: output, shape index: {}, may-alias: {0,4}]  }
   0x1   :  { %v2480_v0 = vld [vmem:[%s3141_s0 + $0x10] sm:$0xff]  ;;  %v2490_v2 = vld [vmem:[%s3141_s0] sm:$0xff]  ;;  %v2502_v5 = vld [vmem:[%s3141_s0 + $0x18] sm:$0xff]  ;;  %2365 = vset.pattern.permute.xlu1 %v2448_v19  ;;  %2364 = vset.pattern.permute.xlu0 %v2448_v19 }
   0x2   :  { %v2485_v1 = vld [vmem:[%s3142_s1 + $0x10] sm:$0xff]  ;;  %v2497_v4 = vld [vmem:[%s3142_s1] sm:$0xff]  ;;  %v2507_v6 = vld [vmem:[%s3142_s1 + $0x18] sm:$0xff] }
   0x3   :  { %v31_v3 = vadd.f32 %v2485_v1, %v2480_v0  ;;  %v29_v7 = vadd.f32 %v2497_v4, %v2490_v2  ;;  %v32_v8 = vadd.f32 %v2507_v6, %v2502_v5  ;;  %v2516_v9 = vld [vmem:[%s3141_s0 + $0x8] sm:$0xff]  ;;  %v2532_v18 = vld [vmem:[%s3143_s2] sm:$0xff]  ;;  %v2547_v21 = vld [vmem:[%s3144_s3 + $0x10] sm:$0xff] }
   0x4   :  { %v2521_v10 = vld [vmem:[%s3142_s1 + $0x8] sm:$0xff]  ;;  %1976 = vmatprep.mubr.msk.f32.mxu0 %vm33_vm0, %v2532_v18  ;;  %v2552_v22 = vld [vmem:[%s3144_s3] sm:$0xff]  ;;  %v2559_v23 = vld [vmem:[%s3144_s3 + $0x18] sm:$0xff] }
   0x5   :  { %v40_v11 = vsel %vm33_vm0, %v31_v3, 0.0  ;;  %v30_v12 = vadd.f32 %v2521_v10, %v2516_v9  ;;  %v34_v13 = vsel %vm33_vm0, %v29_v7, 0.0  ;;  %v43_v14 = vsel %vm33_vm0, %v32_v8, 0.0  ;;  %v2540_v20 = vld [vmem:[%s3144_s3 + $0x8] sm:$0xff]  ;;  %v2565_v24 = vld [vmem:[%s3144_s3 + $0x20] sm:$0xff]  ;;  %v2577_v26 = vld [vmem:[%s3144_s3 + $0x30] sm:$0xff] }
   0x6   :  { %41 = vadd.xlane.f32.xlu1 %v40_v11  ;;  %35 = vadd.xlane.f32.xlu0 %v34_v13  ;;  %v2188_v17 = vpack.c.bf16 %v32_v8, %v31_v3  ;;  %v2571_v25 = vld [vmem:[%s3144_s3 + $0x28] sm:$0xff]  ;;  %v2583_v27 = vld [vmem:[%s3144_s3 + $0x38] sm:$0xff]  ;;  %v2594_v39 = vld [vmem:[%s3143_s2 + $0x10] sm:$0xff] }
   0x7   :  { %v37_v15 = vsel %vm33_vm0, %v30_v12, 0.0  ;;  %v2184_v16 = vpack.c.bf16 %v30_v12, %v29_v7  ;;  %v2589_v38 = vld [vmem:[%s3143_s2 + $0x8] sm:$0xff]  ;;  %v2603_v40 = vld [vmem:[%s3143_s2 + $0x18] sm:$0xff]  ;;  %v2608_v41 = vld [vmem:[%s3143_s2 + $0x20] sm:$0xff] }
   0x8   :  { %v2617_v42 = vld [vmem:[%s3143_s2 + $0x28] sm:$0xff]  ;;  %v2622_v43 = vld [vmem:[%s3143_s2 + $0x30] sm:$0xff]  ;;  %v2631_v44 = vld [vmem:[%s3143_s2 + $0x38] sm:$0xff] }
   0x9   :  { %2185 = vmatprep.subr.bf16.mxu0 %v2184_v16  ;;  %v2638_v45 = vld [vmem:[%s3143_s2 + $0x40] sm:$0xff] }
   0xa   :  { %44 = vadd.xlane.f32.xlu1 %v43_v14  ;;  %38 = vadd.xlane.f32.xlu0 %v37_v15 }
   0xb   :  { %2187 = vmatpush3.bf16.msra.mxu0 %v2184_v16  ;;  %2004 = vmatprep.mubr.msk.f32.mxu1 %vm33_vm0, %v2638_v45 }
   0xc   :  { %2189 = vmatprep.subr.bf16.mxu0 %v2188_v17 }
   0xf   :  { %2191 = vmatpush3.bf16.msra.mxu0 %v2188_v17 }
  0x1b   :  { %82 = vperm.xlu1 %2365, %v2540_v20  }
  0x1f   :  { %87 = vperm.xlu1 %2365, %v2547_v21  }
  0x20   :  { %77 = vperm.xlu0 %2364, %v2552_v22  }
  0x23   :  { %92 = vperm.xlu1 %2365, %v2559_v23  }
  0x24   :  { %2367 = vset.pattern.permute.xlu0 %v2449_v46 }
  0x25   :  { %257 = vperm.xlu0 %2367, %v2540_v20  }
  0x27   :  { %97 = vperm.xlu1 %2365, %v2565_v24  }
  0x29   :  { %261 = vperm.xlu0 %2367, %v2547_v21  }
  0x2b   :  { %102 = vperm.xlu1 %2365, %v2571_v25  }
  0x2d   :  { %277 = vperm.xlu0 %2367, %v2577_v26  }
  0x2f   :  { %107 = vperm.xlu1 %2365, %v2577_v26  }
  0x33   :  { %112 = vperm.xlu1 %2365, %v2583_v27  }
  0x37   :  { %2366 = vset.pattern.permute.xlu1 %v2449_v46 }
  0x38   :  { %253 = vperm.xlu1 %2366, %v2552_v22  }
  0x3c   :  { %269 = vperm.xlu1 %2366, %v2565_v24  }
  0x40   :  { %273 = vperm.xlu1 %2366, %v2571_v25  }
  0x44   :  { %265 = vperm.xlu1 %2366, %v2559_v23  }
  0x48   :  { %281 = vperm.xlu1 %2366, %v2583_v27  }
  0x93   :  { %v42_v28 = vpop.xlane.xlu1 %41  ;;  %v36_v29 = vpop.xlane.xlu0 %35 }
  0x94   :  { %v48_v32 = vmul.f32 0.015625, %v42_v28  ;;  %v46_v33 = vmul.f32 0.015625, %v36_v29 }
  0x97   :  { %v45_v30 = vpop.xlane.xlu1 %44  ;;  %v39_v31 = vpop.xlane.xlu0 %38 }
  0x98   :  { %v49_v34 = vmul.f32 0.015625, %v45_v30  ;;  %v47_v35 = vmul.f32 0.015625, %v39_v31 }
  0x9a   :  { %v2192_v36 = vpack.c.bf16 %v47_v35, %v46_v33  ;;  %v2196_v37 = vpack.c.bf16 %v49_v34, %v48_v32 }
  0x9b   :  { %v83_v47 = vpop.permute.xlu1 %82 }
  0x9c   :  { %2193 = vmatprep.subr.bf16.mxu0 %v2192_v36 }
  0x9d   :  { %2195 = vmatpush3.bf16.msra.mxu0 %v2192_v36 }
  0x9e   :  { %2197 = vmatprep.subr.bf16.mxu0 %v2196_v37 }
  0x9f   :  { %v88_v48 = vpop.permute.xlu1 %87  ;;  %v78_v51 = vpop.permute.xlu0 %77 }
  0xa1   :  { %2199 = vmatpush3.bf16.msra.mxu0 %v2196_v37  ;;  %v2655_v37 = vld [vmem:[%s3143_s2 + $0x48] sm:$0xff] }
  0xa3   :  { %v93_v49 = vpop.permute.xlu1 %92 }
  0xa4   :  { %1977 = vmatmul.mubr.msk.f32.vlgmr.msra.gmra.mrb[0].mxu0 %vm33_vm0, %v2589_v38 }
  0xa5   :  { %1979 = vmatprep.mubr.msk.f32.mxu0 %vm33_vm0, %v2594_v39 }
  0xa7   :  { %v98_v50 = vpop.permute.xlu1 %97 }
  0xa8   :  { %1980 = vmatmul.mubr.msk.f32.gmra.mrb[2].mxu0 %vm33_vm0, %v2603_v40 }
  0xa9   :  { %1982 = vmatprep.mubr.msk.f32.mxu0 %vm33_vm0, %v2608_v41 }
  0xab   :  { %v103_v52 = vpop.permute.xlu1 %102 }
  0xac   :  { %1983 = vmatmul.mubr.msk.f32.gmra.mrb[4].mxu0 %vm33_vm0, %v2617_v42 }
  0xad   :  { %1985 = vmatprep.mubr.msk.f32.mxu0 %vm33_vm0, %v2622_v43 }
  0xaf   :  { %v108_v62 = vpop.permute.xlu1 %107 }
  0xb0   :  { %1986 = vmatmul.mubr.msk.f32.gmra.mrb[6].mxu0 %vm33_vm0, %v2631_v44 }
  0xb3   :  { %v113_v17 = vpop.permute.xlu1 %112 }
 0x177   :  { %v1978_v53 = vpop.f32.mrb[0].mxu0 }
 0x178   :  { %v211_v54 = vadd.f32 %v1978_v53, %v83_v47  ;;  %v205_v55 = vpop.f32.mrb[1].mxu0  ;;  %v2660_v47 = vld [vmem:[%s3143_s2 + $0x50] sm:$0xff]  ;;  %v254_v53 = vpop.permute.xlu1 %253 }
 0x179   :  { %v206_v56 = vadd.f32 %v205_v55, %v78_v51  ;;  %v2688_v51 = vld [vmem:[%s3143_s2 + $0x70] sm:$0xff] }
 0x17a   :  { %v245_v57 = vmax.f32 %v211_v54, 0.0 }
 0x17b   :  { %v244_v58 = vmax.f32 %v206_v56, 0.0  ;;  %v1981_v59 = vpop.f32.mrb[2].mxu0  ;;  %v258_v56 = vpop.permute.xlu0 %257 }
 0x17c   :  { %v221_v60 = vadd.f32 %v1981_v59, %v93_v49  ;;  %v215_v61 = vpop.f32.mrb[3].mxu0  ;;  %v2674_v49 = vld [vmem:[%s3143_s2 + $0x60] sm:$0xff]  ;;  %v270_v54 = vpop.permute.xlu1 %269 }
 0x17d   :  { %v216_v63 = vadd.f32 %v215_v61, %v88_v48  ;;  %v2200_v3 = vpack.c.bf16 %v245_v57, %v244_v58  ;;  %v2669_v48 = vld [vmem:[%s3143_s2 + $0x58] sm:$0xff] }
 0x17e   :  { %v247_v7 = vmax.f32 %v221_v60, 0.0  ;;  %v2314_v60 = vadd.f32 %v270_v54, %v254_v53 }
 0x17f   :  { %v246_v8 = vmax.f32 %v216_v63, 0.0  ;;  %v1984_v11 = vpop.f32.mrb[4].mxu0  ;;  %2201 = vmatprep.subr.bf16.mxu1 %v2200_v3  ;;  %v262_v58 = vpop.permute.xlu0 %261 }
 0x180   :  { %v231_v12 = vadd.f32 %v1984_v11, %v103_v52  ;;  %v225_v13 = vpop.f32.mrb[5].mxu0  ;;  %2203 = vmatpush3.bf16.msra.mxu1 %v2200_v3  ;;  %v2697_v52 = vld [vmem:[%s3143_s2 + $0x78] sm:$0xff]  ;;  %v274_v55 = vpop.permute.xlu1 %273 }
 0x181   :  { %v2204_v14 = vpack.c.bf16 %v247_v7, %v246_v8  ;;  %v226_v15 = vadd.f32 %v225_v13, %v98_v50  ;;  %v2683_v50 = vld [vmem:[%s3143_s2 + $0x68] sm:$0xff]  ;;  %v2312_v59 = vadd.f32 %v274_v55, %v258_v56  ;;  %v2703_v55 = vsub.f32 %v2516_v9, %v2521_v10 }
 0x182   :  { %v249_v16 = vmax.f32 %v231_v12, 0.0  ;;  %v2707_v56 = vsub.f32 %v2490_v2, %v2497_v4  ;;  %v2721_v9 = vsub.f32 %v2502_v5, %v2507_v6  ;;  %v2726_v2 = vsub.f32 %v2480_v0, %v2485_v1  ;;  %v2738_v5 = vld [vmem:[%s3141_s0 + $0x30] sm:$0xff] }
 0x183   :  { %v248_v28 = vmax.f32 %v226_v15, 0.0  ;;  %v1987_v29 = vpop.f32.mrb[6].mxu0  ;;  %2205 = vmatprep.subr.bf16.mxu1 %v2204_v14  ;;  %v278_v63 = vpop.permute.xlu0 %277  ;;  %v2743_v0 = vld [vmem:[%s3142_s1 + $0x30] sm:$0xff] }
 0x184   :  { %v241_v30 = vadd.f32 %v1987_v29, %v113_v17  ;;  %v235_v31 = vpop.f32.mrb[7].mxu0  ;;  %2207 = vmatpush3.bf16.msra.mxu1 %v2204_v14  ;;  %v266_v57 = vpop.permute.xlu1 %265  ;;  %v2318_v13 = vadd.f32 %v278_v63, %v262_v58  ;;  %v2712_v58 = vld [vmem:[%s3141_s0 + $0x20] sm:$0xff] }
 0x185   :  { %v2208_v32 = vpack.c.bf16 %v249_v16, %v248_v28  ;;  %v236_v33 = vadd.f32 %v235_v31, %v108_v62 }
 0x186   :  { %v251_v34 = vmax.f32 %v241_v30, 0.0 }
 0x187   :  { %v250_v35 = vmax.f32 %v236_v33, 0.0  ;;  %2209 = vmatprep.subr.bf16.mxu1 %v2208_v32 }
 0x188   :  { %2211 = vmatpush3.bf16.msra.mxu1 %v2208_v32  ;;  %v282_v61 = vpop.permute.xlu1 %281 }
 0x189   :  { %v2212_v36 = vpack.c.bf16 %v251_v34, %v250_v35  ;;  %v2316_v11 = vadd.f32 %v282_v61, %v266_v57 }
 0x18b   :  { %2213 = vmatprep.subr.bf16.mxu1 %v2212_v36 }
 0x18c   :  { %2215 = vmatpush3.bf16.msra.mxu1 %v2212_v36 }
 0x18f   :  { %2005 = vmatmul.mubr.msk.f32.vlgmr.msra.gmra.mrb[0].mxu1 %vm33_vm0, %v2655_v37 }
 0x190   :  { %2007 = vmatprep.mubr.msk.f32.mxu1 %vm33_vm0, %v2660_v47 }
 0x193   :  { %2008 = vmatmul.mubr.msk.f32.gmra.mrb[2].mxu1 %vm33_vm0, %v2669_v48 }
 0x194   :  { %2010 = vmatprep.mubr.msk.f32.mxu1 %vm33_vm0, %v2674_v49 }
 0x197   :  { %2011 = vmatmul.mubr.msk.f32.gmra.mrb[0].mxu1 %vm33_vm0, %v2683_v50 }
 0x198   :  { %2013 = vmatprep.mubr.msk.f32.mxu1 %vm33_vm0, %v2688_v51 }
 0x19b   :  { %2014 = vmatmul.mubr.msk.f32.gmra.mrb[2].mxu1 %vm33_vm0, %v2697_v52 }
 0x26a   :  { %v2012_v62 = vpop.f32.mrb[0].mxu1 }
 0x26b   :  { %v2313_v3 = vadd.f32 %v2312_v59, %v2012_v62  ;;  %v394_v7 = vpop.f32.mrb[1].mxu1  ;;  %v2717_v59 = vld [vmem:[%s3142_s1 + $0x20] sm:$0xff] }
 0x26c   :  { %v2315_v8 = vadd.f32 %v2314_v60, %v394_v7 }
 0x26d   :  { %v1717_v12 = vmul.f32 -1.442695, %v2313_v3  ;;  %v2732_v3 = vadd.f32 %v2717_v59, %v2712_v58 }
 0x26e   :  { %v1716_v14 = vmul.f32 -1.442695, %v2315_v8  ;;  %v2015_v15 = vpop.f32.mrb[2].mxu1 }
 0x26f   :  { %2378 = vpow2.f32 %v1717_v12  ;;  %v2317_v16 = vadd.f32 %v2316_v11, %v2015_v15  ;;  %v404_v17 = vpop.f32.mrb[3].mxu1 }
 0x270   :  { %2380 = vpow2.f32 %v1716_v14  ;;  %v2319_v28 = vadd.f32 %v2318_v13, %v404_v17  ;;  %v2754_v17 = vadd.f32 %v2743_v0, %v2738_v5 }
 0x271   :  { %v1719_v29 = vmul.f32 -1.442695, %v2317_v16  ;;  %v871_v16 = vsel %vm33_vm0, %v2732_v3, 0.0 }
 0x272   :  { %v1718_v30 = vmul.f32 -1.442695, %v2319_v28 }
 0x273   :  { %2382 = vpow2.f32 %v1719_v29  ;;  %v2760_v29 = vld [vmem:[%s3141_s0 + $0x28] sm:$0xff] }
 0x274   :  { %2384 = vpow2.f32 %v1718_v30 }
 0x279   :  { %v2379_v31 = vpop.eup %2378 }
 0x27a   :  { %v2381_v32 = vpop.eup %2380  ;;  %v430_v33 = vadd.f32 1.0, %v2379_v31 }
 0x27b   :  { %v429_v34 = vadd.f32 1.0, %v2381_v32  ;;  %v877_v32 = vsel %vm33_vm0, %v2754_v17, 0.0 }
 0x27c   :  { %2386 = vrcp.f32 %v430_v33  ;;  %v2775_v33 = vld [vmem:[%s3141_s0 + $0x38] sm:$0xff] }
 0x27d   :  { %v2383_v35 = vpop.eup %2382  ;;  %2388 = vrcp.f32 %v429_v34  ;;  %v2780_v34 = vld [vmem:[%s3142_s1 + $0x38] sm:$0xff] }
 0x27e   :  { %v2385_v36 = vpop.eup %2384  ;;  %v432_v53 = vadd.f32 1.0, %v2383_v35 }
 0x27f   :  { %v431_v54 = vadd.f32 1.0, %v2385_v36 }
 0x280   :  { %2390 = vrcp.f32 %v432_v53  ;;  %v870_v53 = vadd.f32 %v2780_v34, %v2775_v33 }
 0x281   :  { %2392 = vrcp.f32 %v431_v54 }
 0x282   :  { %v880_v54 = vsel %vm33_vm0, %v870_v53, 0.0 }
 0x286   :  { %v2387_v57 = vpop.eup %2386 }
 0x287   :  { %v2389_v60 = vpop.eup %2388  ;;  %v442_v61 = vmul.f32 %v2387_v57, %v2703_v55  ;;  %v2790_v57 = vld [vmem:[%s3143_s2 + $0x80] sm:$0xff] }
 0x288   :  { %v441_v62 = vmul.f32 %v2389_v60, %v2707_v56  ;;  %2032 = vmatprep.mubr.msk.f32.mxu0 %vm33_vm0, %v2790_v57  ;;  %v2450_v60 = vmov 2  }
 0x289   :  { %v446_v63 = vadd.f32 %v442_v61, %v2521_v10  ;;  %2368 = vset.pattern.permute.xlu1 %v2450_v60  ;;  %2369 = vset.pattern.permute.xlu0 %v2450_v60 }
 0x28a   :  { %v2391_v7 = vpop.eup %2390  ;;  %v445_v8 = vadd.f32 %v441_v62, %v2497_v4 }
 0x28b   :  { %v2393_v11 = vpop.eup %2392  ;;  %v452_v10 = vsel %vm33_vm0, %v446_v63, 0.0  ;;  %v444_v12 = vmul.f32 %v2391_v7, %v2721_v9 }
 0x28c   :  { %453 = vadd.xlane.f32.xlu1 %v452_v10  ;;  %v449_v13 = vsel %vm33_vm0, %v445_v8, 0.0  ;;  %v2216_v14 = vpack.c.bf16 %v446_v63, %v445_v8  ;;  %v443_v4 = vmul.f32 %v2393_v11, %v2726_v2 }
 0x28d   :  { %450 = vadd.xlane.f32.xlu0 %v449_v13  ;;  %v448_v15 = vadd.f32 %v444_v12, %v2507_v6  ;;  %v2765_v6 = vld [vmem:[%s3142_s1 + $0x28] sm:$0xff] }
 0x28e   :  { %2217 = vmatprep.subr.bf16.mxu0 %v2216_v14  ;;  %v447_v28 = vadd.f32 %v443_v4, %v2485_v1  ;;  %v868_v1 = vadd.f32 %v2765_v6, %v2760_v29 }
 0x28f   :  { %2219 = vmatpush3.bf16.msra.mxu0 %v2216_v14  ;;  %v458_v35 = vsel %vm33_vm0, %v448_v15, 0.0 }
 0x290   :  { %v455_v30 = vsel %vm33_vm0, %v447_v28, 0.0  ;;  %v2220_v31 = vpack.c.bf16 %v448_v15, %v447_v28  ;;  %872 = vadd.xlane.f32.xlu1 %v871_v16  ;;  %v874_v36 = vsel %vm33_vm0, %v868_v1, 0.0  ;;  %v2248_v14 = vpack.c.bf16 %v868_v1, %v2732_v3  ;;  %v2826_v15 = vld [vmem:[%s3143_s2 + $0x88] sm:$0xff]  ;;  %v2831_v28 = vld [vmem:[%s3143_s2 + $0x90] sm:$0xff]  ;;  %v2841_v1 = vld [vmem:[%s3143_s2 + $0x98] sm:$0xff] }
 0x291   :  { %456 = vadd.xlane.f32.xlu0 %v455_v30 }
 0x292   :  { %2221 = vmatprep.subr.bf16.mxu0 %v2220_v31 }
 0x293   :  { %2223 = vmatpush3.bf16.msra.mxu0 %v2220_v31  ;;  %v2252_v31 = vpack.c.bf16 %v870_v53, %v2754_v17  ;;  %v2846_v17 = vld [vmem:[%s3143_s2 + $0xa0] sm:$0xff] }
 0x294   :  { %878 = vadd.xlane.f32.xlu1 %v877_v32 }
 0x295   :  { %459 = vadd.xlane.f32.xlu0 %v458_v35 }
 0x299   :  { %875 = vadd.xlane.f32.xlu0 %v874_v36 }
 0x29d   :  { %881 = vadd.xlane.f32.xlu0 %v880_v54  ;;  %v2855_v54 = vld [vmem:[%s3143_s2 + $0xa8] sm:$0xff] }
 0x2a5   :  { %484 = vperm.xlu1 %2368, %v2552_v22  }
 0x2a9   :  { %492 = vperm.xlu1 %2368, %v2547_v21  }
 0x2ad   :  { %496 = vperm.xlu1 %2368, %v2559_v23  }
 0x2b1   :  { %500 = vperm.xlu1 %2368, %v2565_v24  }
 0x2b3   :  { %488 = vperm.xlu0 %2369, %v2540_v20  }
 0x2b5   :  { %504 = vperm.xlu1 %2368, %v2571_v25  }
 0x2b7   :  { %2371 = vset.pattern.permute.xlu0 %v2448_v19 }
 0x2b8   :  { %923 = vperm.xlu0 %2371, %v2547_v21  }
 0x2b9   :  { %508 = vperm.xlu1 %2368, %v2577_v26  }
 0x2bc   :  { %938 = vperm.xlu0 %2371, %v2571_v25  }
 0x2bd   :  { %512 = vperm.xlu1 %2368, %v2583_v27  }
 0x2c0   :  { %948 = vperm.xlu0 %2371, %v2583_v27  }
 0x2c1   :  { %2370 = vset.pattern.permute.xlu1 %v2448_v19 }
 0x2c2   :  { %913 = vperm.xlu1 %2370, %v2552_v22  }
 0x2c4   :  { %2373 = vset.pattern.permute.xlu0 %v2449_v46 }
 0x2c5   :  { %1093 = vperm.xlu0 %2373, %v2540_v20  }
 0x2c6   :  { %918 = vperm.xlu1 %2370, %v2540_v20  }
 0x2c9   :  { %1097 = vperm.xlu0 %2373, %v2547_v21  }
 0x2ca   :  { %928 = vperm.xlu1 %2370, %v2559_v23  }
 0x2cd   :  { %1113 = vperm.xlu0 %2373, %v2577_v26  }
 0x2ce   :  { %933 = vperm.xlu1 %2370, %v2565_v24  }
 0x2d1   :  { %2374 = vset.pattern.permute.xlu0 %v2450_v60 }
 0x2d2   :  { %943 = vperm.xlu1 %2370, %v2577_v26  }
 0x2d6   :  { %2372 = vset.pattern.permute.xlu1 %v2449_v46 }
 0x2d7   :  { %1089 = vperm.xlu1 %2372, %v2552_v22  }
 0x2db   :  { %1105 = vperm.xlu1 %2372, %v2565_v24  }
 0x2df   :  { %1109 = vperm.xlu1 %2372, %v2571_v25  }
 0x2e3   :  { %1101 = vperm.xlu1 %2372, %v2559_v23  }
 0x2e7   :  { %1117 = vperm.xlu1 %2372, %v2583_v27  }
 0x2eb   :  { %2375 = vset.pattern.permute.xlu1 %v2450_v60 }
 0x319   :  { %v454_v19 = vpop.xlane.xlu1 %453 }
 0x31a   :  { %v462_v61 = vmul.f32 0.015625, %v454_v19  ;;  %v451_v62 = vpop.xlane.xlu0 %450  ;;  %v2860_v19 = vld [vmem:[%s3143_s2 + $0xb0] sm:$0xff] }
 0x31b   :  { %v461_v63 = vmul.f32 0.015625, %v451_v62 }
 0x31d   :  { %v2224_v7 = vpack.c.bf16 %v462_v61, %v461_v63  ;;  %v873_v12 = vpop.xlane.xlu1 %872  ;;  %v2869_v61 = vld [vmem:[%s3143_s2 + $0xb8] sm:$0xff] }
 0x31e   :  { %v457_v8 = vpop.xlane.xlu0 %456  ;;  %v883_v16 = vmul.f32 0.015625, %v873_v12 }
 0x31f   :  { %2225 = vmatprep.subr.bf16.mxu0 %v2224_v7  ;;  %v463_v11 = vmul.f32 0.015625, %v457_v8 }
 0x320   :  { %2227 = vmatpush3.bf16.msra.mxu0 %v2224_v7 }
 0x321   :  { %v879_v32 = vpop.xlane.xlu1 %878 }
 0x322   :  { %v460_v46 = vpop.xlane.xlu0 %459  ;;  %v885_v36 = vmul.f32 0.015625, %v879_v32 }
 0x323   :  { %v464_v10 = vmul.f32 0.015625, %v460_v46 }
 0x325   :  { %v2228_v13 = vpack.c.bf16 %v464_v10, %v463_v11 }
 0x326   :  { %v876_v4 = vpop.xlane.xlu0 %875 }
 0x327   :  { %2229 = vmatprep.subr.bf16.mxu0 %v2228_v13  ;;  %v884_v30 = vmul.f32 0.015625, %v876_v4 }
 0x328   :  { %2231 = vmatpush3.bf16.msra.mxu0 %v2228_v13 }
 0x329   :  { %2249 = vmatprep.subr.bf16.mxu0 %v2248_v14  ;;  %v2256_v35 = vpack.c.bf16 %v884_v30, %v883_v16 }
 0x32a   :  { %v882_v3 = vpop.xlane.xlu0 %881 }
 0x32b   :  { %2033 = vmatmul.mubr.msk.f32.vlgmr.msra.gmra.mrb[8].mxu0 %vm33_vm0, %v2826_v15  ;;  %v886_v53 = vmul.f32 0.015625, %v882_v3 }
 0x32c   :  { %2251 = vmatpush3.bf16.msra.mxu0 %v2248_v14  ;;  %2035 = vmatprep.mubr.msk.f32.mxu0 %vm33_vm0, %v2831_v28 }
 0x32d   :  { %2253 = vmatprep.subr.bf16.mxu0 %v2252_v31  ;;  %v2260_v60 = vpack.c.bf16 %v886_v53, %v885_v36 }
 0x32f   :  { %2036 = vmatmul.mubr.msk.f32.gmra.mrb[10].mxu0 %vm33_vm0, %v2841_v1 }
 0x330   :  { %2255 = vmatpush3.bf16.msra.mxu0 %v2252_v31  ;;  %2038 = vmatprep.mubr.msk.f32.mxu0 %vm33_vm0, %v2846_v17 }
 0x331   :  { %2257 = vmatprep.subr.bf16.mxu0 %v2256_v35 }
 0x332   :  { %v489_v62 = vpop.permute.xlu0 %488 }
 0x333   :  { %2039 = vmatmul.mubr.msk.f32.gmra.mrb[12].mxu0 %vm33_vm0, %v2855_v54 }
 0x334   :  { %2259 = vmatpush3.bf16.msra.mxu0 %v2256_v35  ;;  %2041 = vmatprep.mubr.msk.f32.mxu0 %vm33_vm0, %v2860_v19 }
 0x335   :  { %2261 = vmatprep.subr.bf16.mxu0 %v2260_v60 }
 0x337   :  { %2042 = vmatmul.mubr.msk.f32.gmra.mrb[14].mxu0 %vm33_vm0, %v2869_v61 }
 0x338   :  { %2263 = vmatpush3.bf16.msra.mxu0 %v2260_v60  ;;  %2088 = vmatprep.mubr.msk.f32.mxu0 %vm33_vm0, %v2532_v18  ;;  %v2894_v18 = vld [vmem:[%s3143_s2 + $0xc0] sm:$0xff] }
 0x339   :  { %2060 = vmatprep.mubr.msk.f32.mxu1 %vm33_vm0, %v2894_v18 }
 0x33b   :  { %2089 = vmatmul.mubr.msk.f32.vlgmr.msra.gmra.mrb[16].mxu0 %vm33_vm0, %v2589_v38  ;;  %v485_v38 = vpop.permute.xlu1 %484 }
 0x33c   :  { %2091 = vmatprep.mubr.msk.f32.mxu0 %vm33_vm0, %v2594_v39 }
 0x33f   :  { %2092 = vmatmul.mubr.msk.f32.gmra.mrb[18].mxu0 %vm33_vm0, %v2603_v40  ;;  %v493_v39 = vpop.permute.xlu1 %492 }
 0x340   :  { %2094 = vmatprep.mubr.msk.f32.mxu0 %vm33_vm0, %v2608_v41 }
 0x343   :  { %2095 = vmatmul.mubr.msk.f32.gmra.mrb[20].mxu0 %vm33_vm0, %v2617_v42  ;;  %v497_v40 = vpop.permute.xlu1 %496 }
 0x344   :  { %2097 = vmatprep.mubr.msk.f32.mxu0 %vm33_vm0, %v2622_v43 }
 0x347   :  { %2098 = vmatmul.mubr.msk.f32.gmra.mrb[22].mxu0 %vm33_vm0, %v2631_v44  ;;  %v501_v41 = vpop.permute.xlu1 %500 }
 0x348   :  { %2144 = vmatprep.mubr.msk.f32.mxu0 %vm33_vm0, %v2790_v57 }
 0x34b   :  { %v505_v42 = vpop.permute.xlu1 %504 }
 0x34f   :  { %v509_v43 = vpop.permute.xlu1 %508 }
 0x353   :  { %v513_v44 = vpop.permute.xlu1 %512 }
 0x357   :  { %v914_v12 = vpop.permute.xlu1 %913 }
 0x35b   :  { %v919_v60 = vpop.permute.xlu1 %918 }
 0x3fe   :  { %v2034_v63 = vpop.f32.mrb[8].mxu0 }
 0x3ff   :  { %v611_v7 = vadd.f32 %v2034_v63, %v489_v62  ;;  %v605_v8 = vpop.f32.mrb[9].mxu0 }
 0x400   :  { %v606_v57 = vadd.f32 %v605_v8, %v485_v38 }
 0x401   :  { %v645_v46 = vmax.f32 %v611_v7, 0.0 }
 0x402   :  { %v644_v11 = vmax.f32 %v606_v57, 0.0  ;;  %v2037_v10 = vpop.f32.mrb[10].mxu0 }
 0x403   :  { %v621_v13 = vadd.f32 %v2037_v10, %v497_v40  ;;  %v615_v14 = vpop.f32.mrb[11].mxu0 }
 0x404   :  { %v2232_v4 = vpack.c.bf16 %v645_v46, %v644_v11  ;;  %v616_v16 = vadd.f32 %v615_v14, %v493_v39  ;;  %v924_v11 = vpop.permute.xlu0 %923 }
 0x405   :  { %v647_v30 = vmax.f32 %v621_v13, 0.0 }
 0x406   :  { %v646_v31 = vmax.f32 %v616_v16, 0.0  ;;  %v2040_v32 = vpop.f32.mrb[12].mxu0  ;;  %2233 = vmatprep.subr.bf16.mxu1 %v2232_v4 }
 0x407   :  { %v631_v3 = vadd.f32 %v2040_v32, %v505_v42  ;;  %v625_v35 = vpop.f32.mrb[13].mxu0  ;;  %2235 = vmatpush3.bf16.msra.mxu1 %v2232_v4  ;;  %v929_v42 = vpop.permute.xlu1 %928 }
 0x408   :  { %v2236_v36 = vpack.c.bf16 %v647_v30, %v646_v31  ;;  %v626_v53 = vadd.f32 %v625_v35, %v501_v41  ;;  %v939_v35 = vpop.permute.xlu0 %938 }
 0x409   :  { %v649_v62 = vmax.f32 %v631_v3, 0.0 }
 0x40a   :  { %v648_v38 = vmax.f32 %v626_v53, 0.0  ;;  %v2043_v63 = vpop.f32.mrb[14].mxu0  ;;  %2237 = vmatprep.subr.bf16.mxu1 %v2236_v36  ;;  %v2906_v53 = vld [vmem:[%s3143_s2 + $0xd0] sm:$0xff] }
 0x40b   :  { %v641_v7 = vadd.f32 %v2043_v63, %v513_v44  ;;  %v635_v8 = vpop.f32.mrb[15].mxu0  ;;  %2239 = vmatpush3.bf16.msra.mxu1 %v2236_v36 }
 0x40c   :  { %v2240_v40 = vpack.c.bf16 %v649_v62, %v648_v38  ;;  %v636_v57 = vadd.f32 %v635_v8, %v509_v43  ;;  %v2901_v43 = vld [vmem:[%s3143_s2 + $0xc8] sm:$0xff]  ;;  %v2915_v8 = vld [vmem:[%s3143_s2 + $0xd8] sm:$0xff] }
 0x40d   :  { %v651_v39 = vmax.f32 %v641_v7, 0.0 }
 0x40e   :  { %v650_v46 = vmax.f32 %v636_v57, 0.0  ;;  %2241 = vmatprep.subr.bf16.mxu1 %v2240_v40  ;;  %v2090_v10 = vpop.f32.mrb[16].mxu0 }
 0x40f   :  { %v1047_v13 = vadd.f32 %v2090_v10, %v919_v60  ;;  %2243 = vmatpush3.bf16.msra.mxu1 %v2240_v40  ;;  %v1041_v14 = vpop.f32.mrb[17].mxu0 }
 0x410   :  { %v2244_v41 = vpack.c.bf16 %v651_v39, %v650_v46  ;;  %v1042_v4 = vadd.f32 %v1041_v14, %v914_v12  ;;  %v934_v12 = vpop.permute.xlu1 %933  ;;  %v2920_v39 = vld [vmem:[%s3143_s2 + $0xe0] sm:$0xff] }
 0x411   :  { %v1081_v16 = vmax.f32 %v1047_v13, 0.0 }
 0x412   :  { %v1080_v30 = vmax.f32 %v1042_v4, 0.0  ;;  %2245 = vmatprep.subr.bf16.mxu1 %v2244_v41  ;;  %v2093_v31 = vpop.f32.mrb[18].mxu0  ;;  %v2929_v4 = vld [vmem:[%s3143_s2 + $0xe8] sm:$0xff] }
 0x413   :  { %v1057_v44 = vadd.f32 %v2093_v31, %v929_v42  ;;  %2247 = vmatpush3.bf16.msra.mxu1 %v2244_v41  ;;  %v1051_v32 = vpop.f32.mrb[19].mxu0  ;;  %v2934_v31 = vld [vmem:[%s3143_s2 + $0xf0] sm:$0xff] }
 0x414   :  { %v2264_v3 = vpack.c.bf16 %v1081_v16, %v1080_v30  ;;  %v1052_v36 = vadd.f32 %v1051_v32, %v924_v11  ;;  %v949_v11 = vpop.permute.xlu0 %948  ;;  %v944_v13 = vpop.permute.xlu1 %943 }
 0x415   :  { %v1083_v60 = vmax.f32 %v1057_v44, 0.0 }
 0x416   :  { %v1082_v62 = vmax.f32 %v1052_v36, 0.0  ;;  %2061 = vmatmul.mubr.msk.f32.vlgmr.msra.gmra.mrb[4].mxu1 %vm33_vm0, %v2901_v43  ;;  %v2096_v38 = vpop.f32.mrb[20].mxu0  ;;  %2265 = vmatprep.subr.bf16.mxu1 %v2264_v3 }
 0x417   :  { %v1067_v63 = vadd.f32 %v2096_v38, %v939_v35  ;;  %v1061_v7 = vpop.f32.mrb[21].mxu0  ;;  %2267 = vmatpush3.bf16.msra.mxu1 %v2264_v3  ;;  %2063 = vmatprep.mubr.msk.f32.mxu1 %vm33_vm0, %v2906_v53  ;;  %v2943_v3 = vld [vmem:[%s3143_s2 + $0xf8] sm:$0xff] }
 0x418   :  { %v2268_v40 = vpack.c.bf16 %v1083_v60, %v1082_v62  ;;  %v1062_v57 = vadd.f32 %v1061_v7, %v934_v12  ;;  %v1094_v12 = vpop.permute.xlu0 %1093 }
 0x419   :  { %v1085_v46 = vmax.f32 %v1067_v63, 0.0 }
 0x41a   :  { %v1084_v10 = vmax.f32 %v1062_v57, 0.0  ;;  %2064 = vmatmul.mubr.msk.f32.gmra.mrb[6].mxu1 %vm33_vm0, %v2915_v8  ;;  %v2099_v42 = vpop.f32.mrb[22].mxu0  ;;  %2269 = vmatprep.subr.bf16.mxu1 %v2268_v40 }
 0x41b   :  { %v1077_v14 = vadd.f32 %v2099_v42, %v949_v11  ;;  %v1071_v41 = vpop.f32.mrb[23].mxu0  ;;  %2271 = vmatpush3.bf16.msra.mxu1 %v2268_v40  ;;  %2066 = vmatprep.mubr.msk.f32.mxu1 %vm33_vm0, %v2920_v39 }
 0x41c   :  { %v2272_v16 = vpack.c.bf16 %v1085_v46, %v1084_v10  ;;  %v1072_v30 = vadd.f32 %v1071_v41, %v944_v13 }
 0x41d   :  { %v1087_v44 = vmax.f32 %v1077_v14, 0.0 }
 0x41e   :  { %v1086_v32 = vmax.f32 %v1072_v30, 0.0  ;;  %2067 = vmatmul.mubr.msk.f32.gmra.mrb[4].mxu1 %vm33_vm0, %v2929_v4  ;;  %2273 = vmatprep.subr.bf16.mxu1 %v2272_v16 }
 0x41f   :  { %2275 = vmatpush3.bf16.msra.mxu1 %v2272_v16  ;;  %2069 = vmatprep.mubr.msk.f32.mxu1 %vm33_vm0, %v2934_v31 }
 0x420   :  { %v2276_v35 = vpack.c.bf16 %v1087_v44, %v1086_v32 }
 0x422   :  { %2070 = vmatmul.mubr.msk.f32.gmra.mrb[6].mxu1 %vm33_vm0, %v2943_v3  ;;  %2277 = vmatprep.subr.bf16.mxu1 %v2276_v35 }
 0x423   :  { %2279 = vmatpush3.bf16.msra.mxu1 %v2276_v35  ;;  %2116 = vmatprep.mubr.msk.f32.mxu1 %vm33_vm0, %v2638_v45  ;;  %v1090_v45 = vpop.permute.xlu1 %1089 }
 0x426   :  { %2117 = vmatmul.mubr.msk.f32.vlgmr.msra.gmra.mrb[8].mxu1 %vm33_vm0, %v2655_v37 }
 0x427   :  { %2119 = vmatprep.mubr.msk.f32.mxu1 %vm33_vm0, %v2660_v47  ;;  %v1106_v37 = vpop.permute.xlu1 %1105 }
 0x428   :  { %v2330_v38 = vadd.f32 %v1106_v37, %v1090_v45 }
 0x42a   :  { %2120 = vmatmul.mubr.msk.f32.gmra.mrb[10].mxu1 %vm33_vm0, %v2669_v48 }
 0x42b   :  { %2122 = vmatprep.mubr.msk.f32.mxu1 %vm33_vm0, %v2674_v49  ;;  %v1110_v36 = vpop.permute.xlu1 %1109 }
 0x42c   :  { %v2328_v62 = vadd.f32 %v1110_v36, %v1094_v12 }
 0x42e   :  { %2123 = vmatmul.mubr.msk.f32.gmra.mrb[8].mxu1 %vm33_vm0, %v2683_v50 }
 0x42f   :  { %2125 = vmatprep.mubr.msk.f32.mxu1 %vm33_vm0, %v2688_v51  ;;  %v1102_v60 = vpop.permute.xlu1 %1101  ;;  %v1098_v51 = vpop.permute.xlu0 %1097 }
 0x432   :  { %2126 = vmatmul.mubr.msk.f32.gmra.mrb[10].mxu1 %vm33_vm0, %v2697_v52 }
 0x433   :  { %2172 = vmatprep.mubr.msk.f32.mxu1 %vm33_vm0, %v2894_v18  ;;  %v1118_v52 = vpop.permute.xlu1 %1117  ;;  %v1114_v7 = vpop.permute.xlu0 %1113 }
 0x434   :  { %v2332_v46 = vadd.f32 %v1118_v52, %v1102_v60  ;;  %v2334_v10 = vadd.f32 %v1114_v7, %v1098_v51  ;;  %v2983_v7 = vsub.f32 %v2775_v33, %v2780_v34 }
 0x4f1   :  { %v2965_v47 = vpop.f32.mrb[4].mxu1 }
 0x4f2   :  { %v2967_v48 = vpop.f32.mrb[5].mxu1 }
 0x4f5   :  { %v2969_v49 = vpop.f32.mrb[6].mxu1 }
 0x4f6   :  { %v2971_v50 = vpop.f32.mrb[7].mxu1 }
 0x501   :  { %v2124_v63 = vpop.f32.mrb[8].mxu1 }
 0x502   :  { %v2329_v18 = vadd.f32 %v2328_v62, %v2124_v63  ;;  %v1230_v40 = vpop.f32.mrb[9].mxu1  ;;  %v2975_v62 = vsub.f32 %v2760_v29, %v2765_v6 }
 0x503   :  { %v2331_v57 = vadd.f32 %v2330_v38, %v1230_v40  ;;  %v2979_v38 = vsub.f32 %v2712_v58, %v2717_v59 }
 0x504   :  { %v1789_v11 = vmul.f32 -1.442695, %v2329_v18 }
 0x505   :  { %v1788_v42 = vmul.f32 -1.442695, %v2331_v57  ;;  %v2127_v13 = vpop.f32.mrb[10].mxu1  ;;  %v2989_v57 = vsub.f32 %v2738_v5, %v2743_v0 }
 0x506   :  { %2394 = vpow2.f32 %v1789_v11  ;;  %v2333_v14 = vadd.f32 %v2332_v46, %v2127_v13  ;;  %v1240_v41 = vpop.f32.mrb[11].mxu1 }
 0x507   :  { %2396 = vpow2.f32 %v1788_v42  ;;  %v2335_v16 = vadd.f32 %v2334_v10, %v1240_v41 }
 0x508   :  { %v1791_v30 = vmul.f32 -1.442695, %v2333_v14 }
 0x509   :  { %v1790_v44 = vmul.f32 -1.442695, %v2335_v16 }
 0x50a   :  { %2398 = vpow2.f32 %v1791_v30 }
 0x50b   :  { %2400 = vpow2.f32 %v1790_v44 }
 0x510   :  { %v2395_v32 = vpop.eup %2394 }
 0x511   :  { %v2397_v35 = vpop.eup %2396  ;;  %v1266_v45 = vadd.f32 1.0, %v2395_v32 }
 0x512   :  { %v1265_v37 = vadd.f32 1.0, %v2397_v35 }
 0x513   :  { %2402 = vrcp.f32 %v1266_v45 }
 0x514   :  { %v2399_v36 = vpop.eup %2398  ;;  %2404 = vrcp.f32 %v1265_v37 }
 0x515   :  { %v2401_v12 = vpop.eup %2400  ;;  %v1268_v60 = vadd.f32 1.0, %v2399_v36 }
 0x516   :  { %v1267_v51 = vadd.f32 1.0, %v2401_v12 }
 0x517   :  { %2406 = vrcp.f32 %v1268_v60 }
 0x518   :  { %2408 = vrcp.f32 %v1267_v51 }
 0x51d   :  { %v2403_v52 = vpop.eup %2402 }
 0x51e   :  { %v2405_v63 = vpop.eup %2404  ;;  %v1278_v18 = vmul.f32 %v2403_v52, %v2975_v62 }
 0x51f   :  { %v1277_v40 = vmul.f32 %v2405_v63, %v2979_v38 }
 0x520   :  { %v1282_v29 = vadd.f32 %v2765_v6, %v1278_v18 }
 0x521   :  { %v2407_v46 = vpop.eup %2406  ;;  %v1281_v58 = vadd.f32 %v2717_v59, %v1277_v40 }
 0x522   :  { %v2409_v11 = vpop.eup %2408  ;;  %v1288_v10 = vsel %vm33_vm0, %v1282_v29, 0.0  ;;  %v1280_v42 = vmul.f32 %v2407_v46, %v2983_v7 }
 0x523   :  { %1289 = vadd.xlane.f32.xlu1 %v1288_v10  ;;  %v1285_v33 = vsel %vm33_vm0, %v1281_v58, 0.0  ;;  %v2280_v13 = vpack.c.bf16 %v1282_v29, %v1281_v58  ;;  %v1279_v14 = vmul.f32 %v2409_v11, %v2989_v57 }
 0x524   :  { %1286 = vadd.xlane.f32.xlu0 %v1285_v33  ;;  %v1284_v5 = vadd.f32 %v2780_v34, %v1280_v42 }
 0x525   :  { %2281 = vmatprep.subr.bf16.mxu0 %v2280_v13  ;;  %v1283_v41 = vadd.f32 %v2743_v0, %v1279_v14  ;;  %v2451_v0 = vmov 3  }
 0x526   :  { %2283 = vmatpush3.bf16.msra.mxu0 %v2280_v13  ;;  %v1294_v30 = vsel %vm33_vm0, %v1284_v5, 0.0 }
 0x527   :  { %v1291_v59 = vsel %vm33_vm0, %v1283_v41, 0.0  ;;  %v2284_v16 = vpack.c.bf16 %v1284_v5, %v1283_v41 }
 0x528   :  { %1292 = vadd.xlane.f32.xlu0 %v1291_v59 }
 0x529   :  { %2285 = vmatprep.subr.bf16.mxu0 %v2284_v16 }
 0x52a   :  { %2287 = vmatpush3.bf16.msra.mxu0 %v2284_v16 }
 0x52c   :  { %1295 = vadd.xlane.f32.xlu0 %v1294_v30 }
 0x534   :  { %1322 = vperm.xlu1 %2375, %v2540_v20  }
 0x538   :  { %1326 = vperm.xlu1 %2375, %v2547_v21  }
 0x53c   :  { %1330 = vperm.xlu1 %2375, %v2559_v23  }
 0x540   :  { %1334 = vperm.xlu1 %2375, %v2565_v24  }
 0x542   :  { %1318 = vperm.xlu0 %2374, %v2552_v22  }
 0x544   :  { %1338 = vperm.xlu1 %2375, %v2571_v25  }
 0x546   :  { %2377 = vset.pattern.permute.xlu0 %v2451_v0 }
 0x547   :  { %657 = vperm.xlu0 %2377, %v2540_v20  }
 0x548   :  { %1342 = vperm.xlu1 %2375, %v2577_v26  }
 0x54b   :  { %669 = vperm.xlu0 %2377, %v2565_v24  }
 0x54c   :  { %1346 = vperm.xlu1 %2375, %v2583_v27  }
 0x54f   :  { %677 = vperm.xlu0 %2377, %v2577_v26  }
 0x550   :  { %2376 = vset.pattern.permute.xlu1 %v2451_v0 }
 0x551   :  { %653 = vperm.xlu1 %2376, %v2552_v22  }
 0x553   :  { %1487 = vperm.xlu0 %2377, %v2552_v22  }
 0x555   :  { %661 = vperm.xlu1 %2376, %v2547_v21  }
 0x557   :  { %1495 = vperm.xlu0 %2377, %v2547_v21  }
 0x559   :  { %665 = vperm.xlu1 %2376, %v2559_v23  }
 0x55b   :  { %1503 = vperm.xlu0 %2377, %v2565_v24  }
 0x55d   :  { %673 = vperm.xlu1 %2376, %v2571_v25  }
 0x55f   :  { %1511 = vperm.xlu0 %2377, %v2577_v26  }
 0x561   :  { %681 = vperm.xlu1 %2376, %v2583_v27  }
 0x565   :  { %1491 = vperm.xlu1 %2376, %v2540_v20  }
 0x569   :  { %1499 = vperm.xlu1 %2376, %v2559_v23  }
 0x56d   :  { %1507 = vperm.xlu1 %2376, %v2571_v25  }
 0x571   :  { %1515 = vperm.xlu1 %2376, %v2583_v27  }
 0x5b0   :  { %v1290_v22 = vpop.xlane.xlu1 %1289 }
 0x5b1   :  { %v1298_v21 = vmul.f32 0.015625, %v1290_v22  ;;  %v1287_v44 = vpop.xlane.xlu0 %1286 }
 0x5b2   :  { %v1297_v32 = vmul.f32 0.015625, %v1287_v44 }
 0x5b4   :  { %v2288_v35 = vpack.c.bf16 %v1298_v21, %v1297_v32  ;;  %v3025_v24 = vpop.permute.xlu1 %1322  ;;  %v2442_v21 = vld [vmem:[%s3142_s1] sm:$0xff] }
 0x5b5   :  { %v1293_v45 = vpop.xlane.xlu0 %1292 }
 0x5b6   :  { %2289 = vmatprep.subr.bf16.mxu0 %v2288_v35  ;;  %v1299_v20 = vmul.f32 0.015625, %v1293_v45 }
 0x5b7   :  { %2291 = vmatpush3.bf16.msra.mxu0 %v2288_v35 }
 0x5b8   :  { %v3027_v26 = vpop.permute.xlu1 %1326 }
 0x5b9   :  { %v1296_v37 = vpop.xlane.xlu0 %1295 }
 0x5ba   :  { %v1300_v36 = vmul.f32 0.015625, %v1296_v37 }
 0x5bc   :  { %v2292_v23 = vpack.c.bf16 %v1300_v36, %v1299_v20  ;;  %v3029_v12 = vpop.permute.xlu1 %1330  ;;  %v2444_v36 = vld [vmem:[%s3142_s1 + $0x8] sm:$0xff] }
 0x5be   :  { %2293 = vmatprep.subr.bf16.mxu0 %v2292_v23 }
 0x5bf   :  { %2295 = vmatpush3.bf16.msra.mxu0 %v2292_v23 }
 0x5c0   :  { %v3031_v25 = vpop.permute.xlu1 %1334 }
 0x5c1   :  { %v3033_v27 = vpop.permute.xlu0 %1318 }
 0x5c2   :  { %2145 = vmatmul.mubr.msk.f32.vlgmr.msra.gmra.mrb[24].mxu0 %vm33_vm0, %v2826_v15 }
 0x5c3   :  { %2147 = vmatprep.mubr.msk.f32.mxu0 %vm33_vm0, %v2831_v28 }
 0x5c4   :  { %v3039_v60 = vpop.permute.xlu1 %1338 }
 0x5c6   :  { %2148 = vmatmul.mubr.msk.f32.gmra.mrb[26].mxu0 %vm33_vm0, %v2841_v1  ;;  %v658_v51 = vpop.permute.xlu0 %657 }
 0x5c7   :  { %2150 = vmatprep.mubr.msk.f32.mxu0 %vm33_vm0, %v2846_v17 }
 0x5c8   :  { %v3045_v52 = vpop.permute.xlu1 %1342 }
 0x5ca   :  { %2151 = vmatmul.mubr.msk.f32.gmra.mrb[28].mxu0 %vm33_vm0, %v2855_v54  ;;  %v670_v28 = vpop.permute.xlu0 %669 }
 0x5cb   :  { %2153 = vmatprep.mubr.msk.f32.mxu0 %vm33_vm0, %v2860_v19 }
 0x5cc   :  { %v3051_v15 = vpop.permute.xlu1 %1346 }
 0x5ce   :  { %2154 = vmatmul.mubr.msk.f32.gmra.mrb[30].mxu0 %vm33_vm0, %v2869_v61  ;;  %v678_v18 = vpop.permute.xlu0 %677 }
 0x5d0   :  { %v654_v63 = vpop.permute.xlu1 %653 }
 0x5d1   :  { %v2322_v1 = vadd.f32 %v670_v28, %v654_v63  ;;  %v2445_v28 = vld [vmem:[%s3142_s1 + $0x18] sm:$0xff] }
 0x5d3   :  { %v2323_v40 = vadd.f32 %v2322_v1, %v2967_v48 }
 0x5d4   :  { %v662_v17 = vpop.permute.xlu1 %661 }
 0x5d5   :  { %v1752_v29 = vmul.f32 -1.442695, %v2323_v40  ;;  %v2326_v46 = vadd.f32 %v678_v18, %v662_v17 }
 0x5d7   :  { %2410 = vpow2.f32 %v1752_v29  ;;  %v2327_v54 = vadd.f32 %v2326_v46, %v2971_v50 }
 0x5d8   :  { %v666_v58 = vpop.permute.xlu1 %665 }
 0x5d9   :  { %v1754_v11 = vmul.f32 -1.442695, %v2327_v54 }
 0x5db   :  { %2412 = vpow2.f32 %v1754_v11 }
 0x5dc   :  { %v674_v19 = vpop.permute.xlu1 %673 }
 0x5dd   :  { %v2320_v10 = vadd.f32 %v674_v19, %v658_v51 }
 0x5df   :  { %v2321_v42 = vadd.f32 %v2320_v10, %v2965_v47 }
 0x5e0   :  { %v682_v33 = vpop.permute.xlu1 %681 }
 0x5e1   :  { %v2411_v61 = vpop.eup %2410  ;;  %v1753_v13 = vmul.f32 -1.442695, %v2321_v42  ;;  %v2324_v14 = vadd.f32 %v682_v33, %v666_v58 }
 0x5e2   :  { %v829_v5 = vadd.f32 1.0, %v2411_v61 }
 0x5e3   :  { %2414 = vpow2.f32 %v1753_v13  ;;  %v2325_v48 = vadd.f32 %v2324_v14, %v2969_v49 }
 0x5e4   :  { %2416 = vrcp.f32 %v829_v5 }
 0x5e5   :  { %v2413_v41 = vpop.eup %2412  ;;  %v1755_v59 = vmul.f32 -1.442695, %v2325_v48 }
 0x5e6   :  { %v831_v16 = vadd.f32 1.0, %v2413_v41 }
 0x5e7   :  { %2418 = vpow2.f32 %v1755_v59 }
 0x5e8   :  { %2420 = vrcp.f32 %v831_v16 }
 0x5ed   :  { %v2415_v50 = vpop.eup %2414 }
 0x5ee   :  { %v2417_v30 = vpop.eup %2416  ;;  %v830_v0 = vadd.f32 1.0, %v2415_v50 }
 0x5ef   :  { %v841_v22 = vmul.f32 %v2417_v30, %v2707_v56  ;;  %v2443_v56 = vld [vmem:[%s3142_s1 + $0x10] sm:$0xff] }
 0x5f0   :  { %2422 = vrcp.f32 %v830_v0 }
 0x5f1   :  { %v2419_v47 = vpop.eup %2418  ;;  %v845_v44 = vadd.f32 %v2442_v21, %v841_v22 }
 0x5f2   :  { %v2421_v32 = vpop.eup %2420  ;;  %v832_v49 = vadd.f32 1.0, %v2419_v47 }
 0x5f3   :  { %849 = vst.msk [vmem:[%s3145_s4] sm:$0xff] %vm33_vm0, %v845_v44  ;;  %v843_v35 = vmul.f32 %v2421_v32, %v2726_v2 }
 0x5f4   :  { %2424 = vrcp.f32 %v832_v49 }
 0x5f5   :  { %v847_v45 = vadd.f32 %v2443_v56, %v843_v35 }
 0x5f7   :  { %851 = vst.msk [vmem:[%s3145_s4 + $0x10] sm:$0xff] %vm33_vm0, %v847_v45 }
 0x5fa   :  { %v2423_v37 = vpop.eup %2422 }
 0x5fb   :  { %v842_v20 = vmul.f32 %v2423_v37, %v2703_v55 }
 0x5fd   :  { %v846_v23 = vadd.f32 %v2444_v36, %v842_v20 }
 0x5fe   :  { %v2425_v2 = vpop.eup %2424 }
 0x5ff   :  { %850 = vst.msk [vmem:[%s3145_s4 + $0x8] sm:$0xff] %vm33_vm0, %v846_v23  ;;  %v844_v51 = vmul.f32 %v2425_v2, %v2721_v9 }
 0x601   :  { %v848_v63 = vadd.f32 %v2445_v28, %v844_v51 }
 0x603   :  { %852 = vst.msk [vmem:[%s3145_s4 + $0x18] sm:$0xff] %vm33_vm0, %v848_v63 }
 0x695   :  { %v2146_v55 = vpop.f32.mrb[24].mxu0 }
 0x696   :  { %v1445_v1 = vadd.f32 %v2146_v55, %v3025_v24  ;;  %v1439_v18 = vpop.f32.mrb[25].mxu0 }
 0x697   :  { %v1440_v40 = vadd.f32 %v1439_v18, %v3033_v27 }
 0x698   :  { %v1479_v17 = vmax.f32 %v1445_v1, 0.0 }
 0x699   :  { %v1478_v29 = vmax.f32 %v1440_v40, 0.0  ;;  %v2149_v46 = vpop.f32.mrb[26].mxu0 }
 0x69a   :  { %v1455_v9 = vadd.f32 %v2149_v46, %v3029_v12  ;;  %v1449_v54 = vpop.f32.mrb[27].mxu0 }
 0x69b   :  { %v2296_v58 = vpack.c.bf16 %v1479_v17, %v1478_v29  ;;  %v1450_v11 = vadd.f32 %v1449_v54, %v3027_v26  ;;  %v2446_v54 = vld [vmem:[%s3142_s1 + $0x20] sm:$0xff] }
 0x69c   :  { %v1481_v19 = vmax.f32 %v1455_v9, 0.0 }
 0x69d   :  { %v1480_v10 = vmax.f32 %v1450_v11, 0.0  ;;  %v2152_v42 = vpop.f32.mrb[28].mxu0  ;;  %2297 = vmatprep.subr.bf16.mxu1 %v2296_v58 }
 0x69e   :  { %v1465_v33 = vadd.f32 %v2152_v42, %v3039_v60  ;;  %v1459_v61 = vpop.f32.mrb[29].mxu0  ;;  %2299 = vmatpush3.bf16.msra.mxu1 %v2296_v58 }
 0x69f   :  { %v2300_v24 = vpack.c.bf16 %v1481_v19, %v1480_v10  ;;  %v1460_v27 = vadd.f32 %v1459_v61, %v3031_v25  ;;  %v1492_v25 = vpop.permute.xlu1 %1491 }
 0x6a0   :  { %v1483_v13 = vmax.f32 %v1465_v33, 0.0 }
 0x6a1   :  { %v1482_v14 = vmax.f32 %v1460_v27, 0.0  ;;  %v2155_v5 = vpop.f32.mrb[30].mxu0  ;;  %2301 = vmatprep.subr.bf16.mxu1 %v2300_v24 }
 0x6a2   :  { %v1475_v12 = vadd.f32 %v2155_v5, %v3051_v15  ;;  %v1469_v48 = vpop.f32.mrb[31].mxu0  ;;  %2303 = vmatpush3.bf16.msra.mxu1 %v2300_v24 }
 0x6a3   :  { %v2304_v26 = vpack.c.bf16 %v1483_v13, %v1482_v14  ;;  %v1470_v41 = vadd.f32 %v1469_v48, %v3045_v52  ;;  %v1500_v52 = vpop.permute.xlu1 %1499 }
 0x6a4   :  { %v1485_v59 = vmax.f32 %v1475_v12, 0.0 }
 0x6a5   :  { %v1484_v16 = vmax.f32 %v1470_v41, 0.0  ;;  %2305 = vmatprep.subr.bf16.mxu1 %v2304_v26 }
 0x6a6   :  { %2307 = vmatpush3.bf16.msra.mxu1 %v2304_v26 }
 0x6a7   :  { %v2308_v60 = vpack.c.bf16 %v1485_v59, %v1484_v16 }
 0x6a9   :  { %2309 = vmatprep.subr.bf16.mxu1 %v2308_v60 }
 0x6aa   :  { %2311 = vmatpush3.bf16.msra.mxu1 %v2308_v60 }
 0x6ad   :  { %2173 = vmatmul.mubr.msk.f32.vlgmr.msra.gmra.mrb[12].mxu1 %vm33_vm0, %v2901_v43  ;;  %v1488_v43 = vpop.permute.xlu0 %1487 }
 0x6ae   :  { %2175 = vmatprep.mubr.msk.f32.mxu1 %vm33_vm0, %v2906_v53  ;;  %v1508_v53 = vpop.permute.xlu1 %1507 }
 0x6af   :  { %v2336_v30 = vadd.f32 %v1508_v53, %v1492_v25 }
 0x6b1   :  { %2176 = vmatmul.mubr.msk.f32.gmra.mrb[14].mxu1 %vm33_vm0, %v2915_v8  ;;  %v1496_v15 = vpop.permute.xlu0 %1495 }
 0x6b2   :  { %2178 = vmatprep.mubr.msk.f32.mxu1 %vm33_vm0, %v2920_v39  ;;  %v1516_v8 = vpop.permute.xlu1 %1515 }
 0x6b3   :  { %v2340_v44 = vadd.f32 %v1516_v8, %v1500_v52 }
 0x6b5   :  { %2179 = vmatmul.mubr.msk.f32.gmra.mrb[12].mxu1 %vm33_vm0, %v2929_v4  ;;  %v1504_v50 = vpop.permute.xlu0 %1503 }
 0x6b6   :  { %2181 = vmatprep.mubr.msk.f32.mxu1 %vm33_vm0, %v2934_v31  ;;  %v2338_v0 = vadd.f32 %v1504_v50, %v1488_v43 }
 0x6b9   :  { %2182 = vmatmul.mubr.msk.f32.gmra.mrb[14].mxu1 %vm33_vm0, %v2943_v3  ;;  %v1512_v39 = vpop.permute.xlu0 %1511 }
 0x6ba   :  { %v2342_v31 = vadd.f32 %v1512_v39, %v1496_v15 }
 0x788   :  { %v2180_v22 = vpop.f32.mrb[12].mxu1 }
 0x789   :  { %v2337_v47 = vadd.f32 %v2336_v30, %v2180_v22  ;;  %v1628_v21 = vpop.f32.mrb[13].mxu1 }
 0x78a   :  { %v2339_v4 = vadd.f32 %v2338_v0, %v1628_v21 }
 0x78b   :  { %v1825_v32 = vmul.f32 -1.442695, %v2337_v47 }
 0x78c   :  { %v1824_v49 = vmul.f32 -1.442695, %v2339_v4  ;;  %v2183_v35 = vpop.f32.mrb[14].mxu1 }
 0x78d   :  { %2426 = vpow2.f32 %v1825_v32  ;;  %v2341_v3 = vadd.f32 %v2340_v44, %v2183_v35  ;;  %v1638_v56 = vpop.f32.mrb[15].mxu1 }
 0x78e   :  { %2428 = vpow2.f32 %v1824_v49  ;;  %v2343_v45 = vadd.f32 %v2342_v31, %v1638_v56 }
 0x78f   :  { %v1827_v37 = vmul.f32 -1.442695, %v2341_v3 }
 0x790   :  { %v1826_v20 = vmul.f32 -1.442695, %v2343_v45 }
 0x791   :  { %2430 = vpow2.f32 %v1827_v37 }
 0x792   :  { %2432 = vpow2.f32 %v1826_v20 }
 0x797   :  { %v2427_v36 = vpop.eup %2426 }
 0x798   :  { %v2429_v23 = vpop.eup %2428  ;;  %v1664_v2 = vadd.f32 1.0, %v2427_v36 }
 0x799   :  { %v1663_v51 = vadd.f32 1.0, %v2429_v23 }
 0x79a   :  { %2434 = vrcp.f32 %v1664_v2 }
 0x79b   :  { %v2431_v28 = vpop.eup %2430  ;;  %2436 = vrcp.f32 %v1663_v51 }
 0x79c   :  { %v2433_v63 = vpop.eup %2432  ;;  %v1666_v55 = vadd.f32 1.0, %v2431_v28 }
 0x79d   :  { %v1665_v1 = vadd.f32 1.0, %v2433_v63 }
 0x79e   :  { %2438 = vrcp.f32 %v1666_v55 }
 0x79f   :  { %2440 = vrcp.f32 %v1665_v1 }
 0x7a4   :  { %v2435_v18 = vpop.eup %2434 }
 0x7a5   :  { %v2437_v40 = vpop.eup %2436  ;;  %v1676_v17 = vmul.f32 %v2435_v18, %v2975_v62 }
 0x7a6   :  { %v1675_v29 = vmul.f32 %v2437_v40, %v2979_v38  ;;  %v2447_v38 = vld [vmem:[%s3142_s1 + $0x30] sm:$0xff] }
 0x7a7   :  { %v1680_v46 = vadd.f32 %v2765_v6, %v1676_v17 }
 0x7a8   :  { %v2439_v9 = vpop.eup %2438  ;;  %v1679_v58 = vadd.f32 %v2446_v54, %v1675_v29 }
 0x7a9   :  { %v2441_v11 = vpop.eup %2440  ;;  %1829 = vst.msk [vmem:[%s3145_s4 + $0x28] sm:$0xff] %vm33_vm0, %v1680_v46  ;;  %v1678_v19 = vmul.f32 %v2439_v9, %v2983_v7 }
 0x7aa   :  { %1828 = vst.msk [vmem:[%s3145_s4 + $0x20] sm:$0xff] %vm33_vm0, %v1679_v58  ;;  %v1677_v6 = vmul.f32 %v2441_v11, %v2989_v57 }
 0x7ab   :  { %v1682_v62 = vadd.f32 %v2780_v34, %v1678_v19 }
 0x7ac   :  { %v1681_v10 = vadd.f32 %v2447_v38, %v1677_v6 }
 0x7ad   :  { %1831 = vst.msk [vmem:[%s3145_s4 + $0x38] sm:$0xff] %vm33_vm0, %v1682_v62 }
 0x7ae   :  { %1830 = vst.msk [vmem:[%s3145_s4 + $0x30] sm:$0xff] %vm33_vm0, %v1681_v10 }

</bundles_post_ra>
